<compile_context>
chip_gen: v5e
topology: v5e:2x2
jax: 0.10.0
libtpu: 0.0.40
codegen_flags: <defaults>
</compile_context>

<pallas_src>
import jax
import jax.numpy as jnp
from jax.experimental import pallas as pl
from jax.experimental.pallas import tpu as pltpu

_LANES = 128
_MAX_TILE_ROWS = 1024  # 1024 x 128 f32 = 512 KiB per input block


def _round_up(x, m):
    return ((x + m - 1) // m) * m


def _make_sum_sq_kernel(num_preds, tile_rows, tiles_per_chunk, full_rows,
                        rem_lanes, needs_mask):
    """Kernel computing per-chunk partial sums of sum_p (gt - pred_p)^2.

    num_preds       : number of prediction refs following gt_ref
    tile_rows       : rows per (tile_rows, 128) block
    tiles_per_chunk : sequential tiles per parallel chunk (grid axis 1 extent)
    full_rows       : fully-valid rows of the flattened (rows, 128) slab
    rem_lanes       : valid lanes in row `full_rows` (0 -> no partial row)
    needs_mask      : trace-time flag; emit tail/overhang masking code only
                      when the block coverage exceeds the valid element count
    """

    def kernel(*refs):
        gt_ref = refs[0]
        pred_refs = refs[1:1 + num_preds]
        o_ref = refs[1 + num_preds]
        acc_ref = refs[2 + num_preds]

        i = pl.program_id(0)  # parallel chunk index
        j = pl.program_id(1)  # sequential tile within the chunk

        @pl.when(j == 0)
        def _():
            acc_ref[...] = jnp.zeros_like(acc_ref)

        gt = gt_ref[...].astype(jnp.float32)
        sq = jnp.zeros((tile_rows, _LANES), jnp.float32)
        for p_ref in pred_refs:
            d = gt - p_ref[...].astype(jnp.float32)
            sq = sq + d * d

        if needs_mask:
            # Mask rows/lanes beyond the original element count.  This covers
            # the lane tail, partial-block row overhang (undefined VMEM), and
            # blocks whose index was clamped in the index_map (their global
            # rows all satisfy grow >= full_rows, so they contribute zero).
            row = jax.lax.broadcasted_iota(jnp.int32, (tile_rows, _LANES), 0)
            lane = jax.lax.broadcasted_iota(jnp.int32, (tile_rows, _LANES), 1)
            g = i * tiles_per_chunk + j
            grow = g * tile_rows + row
            mask = (grow < full_rows) | ((grow == full_rows) &
                                         (lane < rem_lanes))
            sq = jnp.where(mask, sq, 0.0)

        # Elementwise (VPU-only) accumulation; no per-step cross-lane reduce.
        acc_ref[...] += sq

        @pl.when(j == pl.num_programs(1) - 1)
        def _():
            o_ref[...] = jnp.full((1, 1), jnp.sum(acc_ref[...]), jnp.float32)

    return kernel


def _sum_sq(gt, preds, *, max_tile_rows=_MAX_TILE_ROWS):
    """sum_p sum((gt - pred_p)^2) computed in a single Pallas TPU kernel."""
    for p in preds:
        assert p.shape == gt.shape, (p.shape, gt.shape)
    n = gt.size

    gt_flat = gt.reshape(-1)
    pred_flats = [p.reshape(-1) for p in preds]

    # Pad only when size is not lane-aligned (no-op for typical NeRF shapes).
    pad = (-n) % _LANES
    if pad:
        gt_flat = jnp.pad(gt_flat, (0, pad))
        pred_flats = [jnp.pad(p, (0, pad)) for p in pred_flats]
    rows = (n + pad) // _LANES

    tile_rows = min(max_tile_rows, _round_up(rows, 8))
    n_blocks = pl.cdiv(rows, tile_rows)

    # Two parallel chunks when there is enough work to split; on v7x the
    # "parallel" outer axis is sharded across the two TensorCores.
    n_par = 2 if n_blocks >= 2 else 1
    tiles_per_chunk = pl.cdiv(n_blocks, n_par)

    full_rows = n // _LANES
    rem_lanes = n % _LANES
    covered = n_par * tiles_per_chunk * tile_rows * _LANES
    needs_mask = covered > n

    kernel = _make_sum_sq_kernel(len(preds), tile_rows, tiles_per_chunk,
                                 full_rows, rem_lanes, needs_mask)

    slabs = [x.reshape(rows, _LANES) for x in [gt_flat] + pred_flats]

    def in_idx(i, j):
        # Clamp so the uneven last chunk never maps a block fully out of
        # bounds; clamped (duplicate) blocks are zeroed by the in-kernel mask.
        return (jnp.minimum(i * tiles_per_chunk + j, n_blocks - 1), 0)

    in_spec = pl.BlockSpec((tile_rows, _LANES), in_idx)

    partials = pl.pallas_call(
        kernel,
        out_shape=jax.ShapeDtypeStruct((n_par, 1), jnp.float32),
        grid=(n_par, tiles_per_chunk),
        in_specs=[in_spec] * len(slabs),
        out_specs=pl.BlockSpec((1, 1), lambda i, j: (i, 0)),
        scratch_shapes=[pltpu.VMEM((tile_rows, _LANES), jnp.float32)],
        compiler_params=pltpu.CompilerParams(
            dimension_semantics=("parallel", "arbitrary")),
    )(*slabs)
    return jnp.sum(partials)


@jax.jit
def nerf_mse_depth_loss(gt, pred_coarse, pred_fine, gt_depths, pred_depths):
    """JAX/Pallas equivalent of NeRFMSEDepthLoss.forward (returns f32 scalar)."""
    rgb_loss = _sum_sq(gt, [pred_coarse, pred_fine]) / float(gt.size)
    depth_loss = _sum_sq(gt_depths, [pred_depths]) / float(gt_depths.size)
    return rgb_loss + depth_loss


if __name__ == "__main__":
    key = jax.random.PRNGKey(0)
    k1, k2, k3, k4, k5 = jax.random.split(key, 5)

    # Small NeRF-like shapes: batch=2, rays=256, rgb=3 ; one depth per ray.
    gt = jax.random.normal(k1, (2, 256, 3), dtype=jnp.float32)
    pred_coarse = jax.random.normal(k2, (2, 256, 3), dtype=jnp.float32)
    pred_fine = jax.random.normal(k3, (2, 256, 3), dtype=jnp.float32)
    gt_depths = jax.random.uniform(k4, (2, 256), dtype=jnp.float32)
    pred_depths = jax.random.uniform(k5, (2, 256), dtype=jnp.float32)

    loss = nerf_mse_depth_loss(gt, pred_coarse, pred_fine, gt_depths,
                               pred_depths)
    loss = jax.block_until_ready(loss)

    ref = (jnp.mean((gt - pred_coarse) ** 2)
           + jnp.mean((gt - pred_fine) ** 2)
           + jnp.mean((gt_depths - pred_depths) ** 2))
    assert jnp.allclose(loss, ref, rtol=1e-5, atol=1e-5), (loss, ref)

    # Second case with non-lane-aligned sizes to exercise padding + masking.
    g2 = jax.random.normal(k1, (2, 250, 3), dtype=jnp.float32)
    pc2 = jax.random.normal(k2, (2, 250, 3), dtype=jnp.float32)
    pf2 = jax.random.normal(k3, (2, 250, 3), dtype=jnp.float32)
    gd2 = jax.random.uniform(k4, (2, 250), dtype=jnp.float32)
    pd2 = jax.random.uniform(k5, (2, 250), dtype=jnp.float32)
    loss2 = jax.block_until_ready(nerf_mse_depth_loss(g2, pc2, pf2, gd2, pd2))
    ref2 = (jnp.mean((g2 - pc2) ** 2) + jnp.mean((g2 - pf2) ** 2)
            + jnp.mean((gd2 - pd2) ** 2))
    assert jnp.allclose(loss2, ref2, rtol=1e-5, atol=1e-5), (loss2, ref2)

    print("KERNEL_OK")
</pallas_src>

<mosaic_0001>
module attributes {stable_mosaic.version = 11 : i64} {
  func.func @kernel(%arg0: i32, %arg1: i32, %arg2: memref<16x128xf32, #tpu.memory_space<vmem>>, %arg3: memref<16x128xf32, #tpu.memory_space<vmem>>, %arg4: memref<16x128xf32, #tpu.memory_space<vmem>>, %arg5: memref<1x1xf32, #tpu.memory_space<vmem>>, %arg6: memref<16x128xf32, #tpu.memory_space<vmem>>) attributes {dimension_semantics = [#tpu.dimension_semantics<parallel>, #tpu.dimension_semantics<arbitrary>], iteration_bounds = array<i64: 1, 1>, scalar_prefetch = 0 : i64, scratch_operands = 1 : i64, tpu.core_type = #tpu.core_type<tc>, window_params = [{transform_indices = @transform_0, window_bounds = array<i64: 16, 128>}, {transform_indices = @transform_1, window_bounds = array<i64: 16, 128>}, {transform_indices = @transform_2, window_bounds = array<i64: 16, 128>}, {transform_indices = @transform_3, window_bounds = array<i64: 1, 1>}]} {
    %c0_i32 = arith.constant 0 : i32
    %0 = arith.cmpi eq, %arg1, %c0_i32 : i32
    %1 = arith.extui %0 : i1 to i32
    %c0_i32_0 = arith.constant 0 : i32
    %2 = arith.cmpi ne, %1, %c0_i32_0 : i32
    scf.if %2 {
      %cst_15 = arith.constant 0.000000e+00 : f32
      %36 = vector.broadcast %cst_15 : f32 to vector<16x128xf32>
      %c0_16 = arith.constant 0 : index
      %c0_17 = arith.constant 0 : index
      %37 = vector.load %arg6[%c0_16, %c0_17] : memref<16x128xf32, #tpu.memory_space<vmem>>, vector<16x128xf32>
      tpu.vector_store %arg6[%c0_16, %c0_17], %36 {strides = array<i32>} : memref<16x128xf32, #tpu.memory_space<vmem>>, vector<16x128xf32>,
    } else {
    }
    %c0 = arith.constant 0 : index
    %c0_1 = arith.constant 0 : index
    %3 = vector.load %arg2[%c0, %c0_1] : memref<16x128xf32, #tpu.memory_space<vmem>>, vector<16x128xf32>
    %cst = arith.constant 0.000000e+00 : f32
    %4 = vector.broadcast %cst : f32 to vector<16x128xf32>
    %c0_2 = arith.constant 0 : index
    %c0_3 = arith.constant 0 : index
    %5 = vector.load %arg3[%c0_2, %c0_3] : memref<16x128xf32, #tpu.memory_space<vmem>>, vector<16x128xf32>
    %6 = arith.subf %3, %5 : vector<16x128xf32>
    %7 = arith.mulf %6, %6 : vector<16x128xf32>
    %8 = arith.addf %4, %7 : vector<16x128xf32>
    %c0_4 = arith.constant 0 : index
    %c0_5 = arith.constant 0 : index
    %9 = vector.load %arg4[%c0_4, %c0_5] : memref<16x128xf32, #tpu.memory_space<vmem>>, vector<16x128xf32>
    %10 = arith.subf %3, %9 : vector<16x128xf32>
    %11 = arith.mulf %10, %10 : vector<16x128xf32>
    %12 = arith.addf %8, %11 : vector<16x128xf32>
    %13 = tpu.iota {dimensions = array<i32: 0>} : vector<16x128xi32>
    %14 = tpu.iota {dimensions = array<i32: 1>} : vector<16x128xi32>
    %c1_i32 = arith.constant 1 : i32
    %15 = arith.muli %arg0, %c1_i32 : i32
    %16 = arith.addi %15, %arg1 : i32
    %c16_i32 = arith.constant 16 : i32
    %17 = arith.muli %16, %c16_i32 : i32
    %18 = vector.broadcast %17 : i32 to vector<16x128xi32>
    %19 = arith.addi %18, %13 : vector<16x128xi32>
    %c12_i32 = arith.constant 12 : i32
    %20 = vector.broadcast %c12_i32 : i32 to vector<16x128xi32>
    %21 = arith.cmpi slt, %19, %20 : vector<16x128xi32>
    %c12_i32_6 = arith.constant 12 : i32
    %22 = vector.broadcast %c12_i32_6 : i32 to vector<16x128xi32>
    %23 = arith.cmpi eq, %19, %22 : vector<16x128xi32>
    %c0_i32_7 = arith.constant 0 : i32
    %24 = vector.broadcast %c0_i32_7 : i32 to vector<16x128xi32>
    %25 = arith.cmpi slt, %14, %24 : vector<16x128xi32>
    %26 = arith.andi %23, %25 : vector<16x128xi1>
    %27 = arith.ori %21, %26 : vector<16x128xi1>
    %cst_8 = arith.constant 0.000000e+00 : f32
    %28 = vector.broadcast %cst_8 : f32 to vector<16x128xf32>
    %29 = arith.select %27, %12, %28 : vector<16x128xi1>, vector<16x128xf32>
    %c0_9 = arith.constant 0 : index
    %c0_10 = arith.constant 0 : index
    %30 = vector.load %arg6[%c0_9, %c0_10] : memref<16x128xf32, #tpu.memory_space<vmem>>, vector<16x128xf32>
    %31 = arith.addf %30, %29 : vector<16x128xf32>
    %c0_11 = arith.constant 0 : index
    %c0_12 = arith.constant 0 : index
    %32 = vector.load %arg6[%c0_11, %c0_12] : memref<16x128xf32, #tpu.memory_space<vmem>>, vector<16x128xf32>
    tpu.vector_store %arg6[%c0_11, %c0_12], %31 {strides = array<i32>} : memref<16x128xf32, #tpu.memory_space<vmem>>, vector<16x128xf32>,
    %c0_i32_13 = arith.constant 0 : i32
    %33 = arith.cmpi eq, %arg1, %c0_i32_13 : i32
    %34 = arith.extui %33 : i1 to i32
    %c0_i32_14 = arith.constant 0 : i32
    %35 = arith.cmpi ne, %34, %c0_i32_14 : i32
    scf.if %35 {
      %c0_15 = arith.constant 0 : index
      %c0_16 = arith.constant 0 : index
      %36 = vector.load %arg6[%c0_15, %c0_16] : memref<16x128xf32, #tpu.memory_space<vmem>>, vector<16x128xf32>
      %37 = vector.shape_cast %36 : vector<16x128xf32> to vector<1x16x128xf32>
      %cst_17 = arith.constant dense<0.000000e+00> : vector<1xf32>
      %38 = vector.multi_reduction <add>, %37, %cst_17 [1, 2] : vector<1x16x128xf32> to vector<1xf32>
      %39 = vector.shape_cast %38 : vector<1xf32> to vector<1x1x1xf32>
      %40 = vector.extract %39[0, 0, 0] : f32 from vector<1x1x1xf32>
      %41 = vector.broadcast %40 : f32 to vector<1x1xf32>
      %c0_18 = arith.constant 0 : index
      %c0_19 = arith.constant 0 : index
      %42 = vector.load %arg5[%c0_18, %c0_19] : memref<1x1xf32, #tpu.memory_space<vmem>>, vector<1x1xf32>
      tpu.vector_store %arg5[%c0_18, %c0_19], %41 {strides = array<i32>} : memref<1x1xf32, #tpu.memory_space<vmem>>, vector<1x1xf32>,
    } else {
    }
    return
  }
  func.func @transform_0(%arg0: i32, %arg1: i32) -> (i32, i32) {
    %c1_i32 = arith.constant 1 : i32
    %0 = arith.muli %arg0, %c1_i32 : i32
    %1 = arith.addi %0, %arg1 : i32
    %c0_i32 = arith.constant 0 : i32
    %2 = arith.minsi %1, %c0_i32 : i32
    %c0_i32_0 = arith.constant 0 : i32
    %c0_i32_1 = arith.constant 0 : i32
    return %2, %c0_i32_0 : i32, i32
  }
  func.func @transform_1(%arg0: i32, %arg1: i32) -> (i32, i32) {
    %c1_i32 = arith.constant 1 : i32
    %0 = arith.muli %arg0, %c1_i32 : i32
    %1 = arith.addi %0, %arg1 : i32
    %c0_i32 = arith.constant 0 : i32
    %2 = arith.minsi %1, %c0_i32 : i32
    %c0_i32_0 = arith.constant 0 : i32
    %c0_i32_1 = arith.constant 0 : i32
    return %2, %c0_i32_0 : i32, i32
  }
  func.func @transform_2(%arg0: i32, %arg1: i32) -> (i32, i32) {
    %c1_i32 = arith.constant 1 : i32
    %0 = arith.muli %arg0, %c1_i32 : i32
    %1 = arith.addi %0, %arg1 : i32
    %c0_i32 = arith.constant 0 : i32
    %2 = arith.minsi %1, %c0_i32 : i32
    %c0_i32_0 = arith.constant 0 : i32
    %c0_i32_1 = arith.constant 0 : i32
    return %2, %c0_i32_0 : i32, i32
  }
  func.func @transform_3(%arg0: i32, %arg1: i32) -> (i32, i32) {
    %c0_i32 = arith.constant 0 : i32
    %c0_i32_0 = arith.constant 0 : i32
    return %arg0, %c0_i32 : i32, i32
  }
}

module attributes {stable_mosaic.version = 11 : i64} {
  func.func @kernel(%arg0: i32, %arg1: i32, %arg2: memref<8x128xf32, #tpu.memory_space<vmem>>, %arg3: memref<8x128xf32, #tpu.memory_space<vmem>>, %arg4: memref<1x1xf32, #tpu.memory_space<vmem>>, %arg5: memref<8x128xf32, #tpu.memory_space<vmem>>) attributes {dimension_semantics = [#tpu.dimension_semantics<parallel>, #tpu.dimension_semantics<arbitrary>], iteration_bounds = array<i64: 1, 1>, scalar_prefetch = 0 : i64, scratch_operands = 1 : i64, tpu.core_type = #tpu.core_type<tc>, window_params = [{transform_indices = @transform_0, window_bounds = array<i64: 8, 128>}, {transform_indices = @transform_1, window_bounds = array<i64: 8, 128>}, {transform_indices = @transform_2, window_bounds = array<i64: 1, 1>}]} {
    %c0_i32 = arith.constant 0 : i32
    %0 = arith.cmpi eq, %arg1, %c0_i32 : i32
    %1 = arith.extui %0 : i1 to i32
    %c0_i32_0 = arith.constant 0 : i32
    %2 = arith.cmpi ne, %1, %c0_i32_0 : i32
    scf.if %2 {
      %cst_13 = arith.constant 0.000000e+00 : f32
      %32 = vector.broadcast %cst_13 : f32 to vector<8x128xf32>
      %c0_14 = arith.constant 0 : index
      %c0_15 = arith.constant 0 : index
      %33 = vector.load %arg5[%c0_14, %c0_15] : memref<8x128xf32, #tpu.memory_space<vmem>>, vector<8x128xf32>
      tpu.vector_store %arg5[%c0_14, %c0_15], %32 {strides = array<i32>} : memref<8x128xf32, #tpu.memory_space<vmem>>, vector<8x128xf32>,
    } else {
    }
    %c0 = arith.constant 0 : index
    %c0_1 = arith.constant 0 : index
    %3 = vector.load %arg2[%c0, %c0_1] : memref<8x128xf32, #tpu.memory_space<vmem>>, vector<8x128xf32>
    %cst = arith.constant 0.000000e+00 : f32
    %4 = vector.broadcast %cst : f32 to vector<8x128xf32>
    %c0_2 = arith.constant 0 : index
    %c0_3 = arith.constant 0 : index
    %5 = vector.load %arg3[%c0_2, %c0_3] : memref<8x128xf32, #tpu.memory_space<vmem>>, vector<8x128xf32>
    %6 = arith.subf %3, %5 : vector<8x128xf32>
    %7 = arith.mulf %6, %6 : vector<8x128xf32>
    %8 = arith.addf %4, %7 : vector<8x128xf32>
    %9 = tpu.iota {dimensions = array<i32: 0>} : vector<8x128xi32>
    %10 = tpu.iota {dimensions = array<i32: 1>} : vector<8x128xi32>
    %c1_i32 = arith.constant 1 : i32
    %11 = arith.muli %arg0, %c1_i32 : i32
    %12 = arith.addi %11, %arg1 : i32
    %c8_i32 = arith.constant 8 : i32
    %13 = arith.muli %12, %c8_i32 : i32
    %14 = vector.broadcast %13 : i32 to vector<8x128xi32>
    %15 = arith.addi %14, %9 : vector<8x128xi32>
    %c4_i32 = arith.constant 4 : i32
    %16 = vector.broadcast %c4_i32 : i32 to vector<8x128xi32>
    %17 = arith.cmpi slt, %15, %16 : vector<8x128xi32>
    %c4_i32_4 = arith.constant 4 : i32
    %18 = vector.broadcast %c4_i32_4 : i32 to vector<8x128xi32>
    %19 = arith.cmpi eq, %15, %18 : vector<8x128xi32>
    %c0_i32_5 = arith.constant 0 : i32
    %20 = vector.broadcast %c0_i32_5 : i32 to vector<8x128xi32>
    %21 = arith.cmpi slt, %10, %20 : vector<8x128xi32>
    %22 = arith.andi %19, %21 : vector<8x128xi1>
    %23 = arith.ori %17, %22 : vector<8x128xi1>
    %cst_6 = arith.constant 0.000000e+00 : f32
    %24 = vector.broadcast %cst_6 : f32 to vector<8x128xf32>
    %25 = arith.select %23, %8, %24 : vector<8x128xi1>, vector<8x128xf32>
    %c0_7 = arith.constant 0 : index
    %c0_8 = arith.constant 0 : index
    %26 = vector.load %arg5[%c0_7, %c0_8] : memref<8x128xf32, #tpu.memory_space<vmem>>, vector<8x128xf32>
    %27 = arith.addf %26, %25 : vector<8x128xf32>
    %c0_9 = arith.constant 0 : index
    %c0_10 = arith.constant 0 : index
    %28 = vector.load %arg5[%c0_9, %c0_10] : memref<8x128xf32, #tpu.memory_space<vmem>>, vector<8x128xf32>
    tpu.vector_store %arg5[%c0_9, %c0_10], %27 {strides = array<i32>} : memref<8x128xf32, #tpu.memory_space<vmem>>, vector<8x128xf32>,
    %c0_i32_11 = arith.constant 0 : i32
    %29 = arith.cmpi eq, %arg1, %c0_i32_11 : i32
    %30 = arith.extui %29 : i1 to i32
    %c0_i32_12 = arith.constant 0 : i32
    %31 = arith.cmpi ne, %30, %c0_i32_12 : i32
    scf.if %31 {
      %c0_13 = arith.constant 0 : index
      %c0_14 = arith.constant 0 : index
      %32 = vector.load %arg5[%c0_13, %c0_14] : memref<8x128xf32, #tpu.memory_space<vmem>>, vector<8x128xf32>
      %33 = vector.shape_cast %32 : vector<8x128xf32> to vector<1x8x128xf32>
      %cst_15 = arith.constant dense<0.000000e+00> : vector<1xf32>
      %34 = vector.multi_reduction <add>, %33, %cst_15 [1, 2] : vector<1x8x128xf32> to vector<1xf32>
      %35 = vector.shape_cast %34 : vector<1xf32> to vector<1x1x1xf32>
      %36 = vector.extract %35[0, 0, 0] : f32 from vector<1x1x1xf32>
      %37 = vector.broadcast %36 : f32 to vector<1x1xf32>
      %c0_16 = arith.constant 0 : index
      %c0_17 = arith.constant 0 : index
      %38 = vector.load %arg4[%c0_16, %c0_17] : memref<1x1xf32, #tpu.memory_space<vmem>>, vector<1x1xf32>
      tpu.vector_store %arg4[%c0_16, %c0_17], %37 {strides = array<i32>} : memref<1x1xf32, #tpu.memory_space<vmem>>, vector<1x1xf32>,
    } else {
    }
    return
  }
  func.func @transform_0(%arg0: i32, %arg1: i32) -> (i32, i32) {
    %c1_i32 = arith.constant 1 : i32
    %0 = arith.muli %arg0, %c1_i32 : i32
    %1 = arith.addi %0, %arg1 : i32
    %c0_i32 = arith.constant 0 : i32
    %2 = arith.minsi %1, %c0_i32 : i32
    %c0_i32_0 = arith.constant 0 : i32
    %c0_i32_1 = arith.constant 0 : i32
    return %2, %c0_i32_0 : i32, i32
  }
  func.func @transform_1(%arg0: i32, %arg1: i32) -> (i32, i32) {
    %c1_i32 = arith.constant 1 : i32
    %0 = arith.muli %arg0, %c1_i32 : i32
    %1 = arith.addi %0, %arg1 : i32
    %c0_i32 = arith.constant 0 : i32
    %2 = arith.minsi %1, %c0_i32 : i32
    %c0_i32_0 = arith.constant 0 : i32
    %c0_i32_1 = arith.constant 0 : i32
    return %2, %c0_i32_0 : i32, i32
  }
  func.func @transform_2(%arg0: i32, %arg1: i32) -> (i32, i32) {
    %c0_i32 = arith.constant 0 : i32
    %c0_i32_0 = arith.constant 0 : i32
    return %arg0, %c0_i32 : i32, i32
  }
}

</mosaic_0001>

<bundles_post_ra>
// kernel: nerf_mse_depth_loss.2
= control target key start
LH: loop header
LB: loop body
LE: loop exit
PB: predicated region body
PF: predicated region fallthrough
CT: control target
= control target key end

     0   :  { %v135_v3 = vlaneseq  ;;  %s285_s0 = inlined_call_operand.vmem [shape: f32[12,128], index: 0, kind: input, shape index: {}]   ;;  %s286_s1 = inlined_call_operand.vmem [shape: f32[12,128], index: 1, kind: input, shape index: {}]   ;;  %s287_s2 = inlined_call_operand.vmem [shape: f32[12,128], index: 2, kind: input, shape index: {}]   ;;  %s288_s3 = inlined_call_operand.hbm [shape: f32[1,1], index: 3, kind: output, shape index: {}]  }
   0x1   :  { %v117_v0 = vld [vmem:[%s285_s0] sm:$0xff]  ;;  %v118_v1 = vld [vmem:[%s285_s0 + $0x8] sm:$0xff] }
   0x2   :  { %v119_v2 = vld [vmem:[%s286_s1] sm:$0xff]  ;;  %v120_v4 = vld [vmem:[%s286_s1 + $0x8] sm:$0xff]  ;;  %v136_v11 = vshrl.u32 %v135_v3, 7 }
   0x3   :  { %v121_v5 = vsub.f32 %v117_v0, %v119_v2  ;;  %v127_v6 = vld [vmem:[%s287_s2] sm:$0xff]  ;;  %v128_v7 = vld [vmem:[%s287_s2 + $0x8] sm:$0xff]  ;;  %v122_v8 = vsub.f32 %v118_v1, %v120_v4 }
   0x4   :  { %v129_v9 = vsub.f32 %v117_v0, %v127_v6  ;;  %v130_v10 = vsub.f32 %v118_v1, %v128_v7 }
   0x5   :  { %8 = vsyncpa [#allocation4], 0  ;;  %v123_v12 = vmul.f32 %v121_v5, %v121_v5  ;;  %v124_v13 = vmul.f32 %v122_v8, %v122_v8  ;;  %v137_v16 = vadd.s32 8, %v136_v11  ;;  %s243_s0 = smov [#allocation3]   ;;  %s187_s25 = sshll.u32 %s288_s3, 4  ;;  %vm178_vm1 = vcmask 0   ;;  %s188_s25 = int_to_ptr.hbm [resolvable:$true] %s187_s25 }
   0x6   :  { %v131_v14 = vmul.f32 %v129_v9, %v129_v9  ;;  %v132_v15 = vmul.f32 %v130_v10, %v130_v10  ;;  %s185_s1 = sshll.u32 %s243_s0, 4  ;;  %s186_s1 = int_to_ptr.vmem [resolvable:$true] %s185_s1 }
   0x7   :  { %vm146_vm0 = vcmp.lt.s32.totalorder %v137_v16, 12 }
   0x8   :  { %v133_v17 = vadd.f32 %v131_v14, %v123_v12  ;;  %v134_v18 = vadd.f32 %v132_v15, %v124_v13 }
   0xa   :  { %v155_v19 = vsel %vm146_vm0, %v134_v18, 0.0 }
   0xb   :  { %v167_v20 = vadd.f32 %v155_v19, %v133_v17 }
   0xd   :  { %168 = vadd.xlane.f32.xlu0 %v167_v20 }
  0x80   :  { %v169_v21 = vpop.xlane.xlu0 %168 }
  0x81   :  { %v170_v22 = vrot.slane %v169_v21, 4 }
  0x83   :  { %v171_v23 = vadd.f32 %v170_v22, %v169_v21 }
  0x85   :  { %v172_v24 = vrot.slane %v171_v23, 2 }
  0x87   :  { %v173_v25 = vadd.f32 %v172_v24, %v171_v23 }
  0x89   :  { %v174_v26 = vrot.slane %v173_v25, 1 }
  0x8b   :  { %v175_v27 = vadd.f32 %v174_v26, %v173_v25 }
  0x8d   :  { %214 = vpush %v175_v27 }
  0xbe   :  { %s215_s26 = spop %214 }
  0xbf   :  { %v177_v28 = vstv %s215_s26 }
  0xc0   :  { %179 = vst.msk [vmem:[#allocation3] sm:$0x1] %vm178_vm1, %v177_v28 }
  0xc1   :  { %190 = dma.vmem_to_hbm [thread:$0]  %s186_s1, 16, %s188_s25, [#allocation4]  }
  0xc2   :  { %241 = dma.done.wait [#allocation4], 16  }
  0xc3   :  { %242 = vsyncadd [#allocation4], 4294967280 }
  0xc4   :  { %195 = vsyncpa [#allocation4], 1 }

// kernel: nerf_mse_depth_loss.3
= control target key start
LH: loop header
LB: loop body
LE: loop exit
PB: predicated region body
PF: predicated region fallthrough
CT: control target
= control target key end

     0   :  { %v106_v2 = vlaneseq  ;;  %s221_s0 = inlined_call_operand.vmem [shape: f32[4,128], index: 0, kind: input, shape index: {}]   ;;  %s222_s1 = inlined_call_operand.vmem [shape: f32[4,128], index: 1, kind: input, shape index: {}]   ;;  %s223_s2 = inlined_call_operand.hbm [shape: f32[1,1], index: 2, kind: output, shape index: {}]  }
   0x1   :  { %v101_v0 = vld [vmem:[%s221_s0] sm:$0xff] }
   0x2   :  { %v102_v1 = vld [vmem:[%s222_s1] sm:$0xff] }
   0x3   :  { %7 = vsyncpa [#allocation4], 0  ;;  %v103_v3 = vsub.f32 %v101_v0, %v102_v1  ;;  %v107_v4 = vshrl.u32 %v106_v2, 7  ;;  %s196_s0 = smov [#allocation3]   ;;  %s146_s15 = sshll.u32 %s223_s2, 4  ;;  %vm137_vm1 = vcmask 0   ;;  %s147_s15 = int_to_ptr.hbm [resolvable:$true] %s146_s15 }
   0x4   :  { %s144_s13 = sshll.u32 %s196_s0, 4  ;;  %s145_s13 = int_to_ptr.vmem [resolvable:$true] %s144_s13 }
   0x5   :  { %v104_v5 = vmul.f32 %v103_v3, %v103_v3  ;;  %vm114_vm0 = vcmp.lt.s32.totalorder %v107_v4, 4 }
   0x7   :  { %v119_v6 = vsel %vm114_vm0, %v104_v5, 0.0 }
   0x8   :  { %127 = vadd.xlane.f32.xlu0 %v119_v6 }
  0x7b   :  { %v128_v7 = vpop.xlane.xlu0 %127 }
  0x7c   :  { %v129_v8 = vrot.slane %v128_v7, 4 }
  0x7e   :  { %v130_v9 = vadd.f32 %v129_v8, %v128_v7 }
  0x80   :  { %v131_v10 = vrot.slane %v130_v9, 2 }
  0x82   :  { %v132_v11 = vadd.f32 %v131_v10, %v130_v9 }
  0x84   :  { %v133_v12 = vrot.slane %v132_v11, 1 }
  0x86   :  { %v134_v13 = vadd.f32 %v133_v12, %v132_v11 }
  0x88   :  { %167 = vpush %v134_v13 }
  0xb9   :  { %s168_s16 = spop %167 }
  0xba   :  { %v136_v14 = vstv %s168_s16 }
  0xbb   :  { %138 = vst.msk [vmem:[#allocation3] sm:$0x1] %vm137_vm1, %v136_v14 }
  0xbc   :  { %149 = dma.vmem_to_hbm [thread:$0]  %s145_s13, 16, %s147_s15, [#allocation4]  }
  0xbd   :  { %194 = dma.done.wait [#allocation4], 16  }
  0xbe   :  { %195 = vsyncadd [#allocation4], 4294967280 }
  0xbf   :  { %154 = vsyncpa [#allocation4], 1 }

</bundles_post_ra>
